<compile_context>
chip_gen: v7x
topology: tpu7x:2x2x1
jax: 0.10.0
libtpu: 0.0.40
codegen_flags: <defaults>
</compile_context>

<pallas_src>
import math
import functools

import jax
import jax.numpy as jnp
from jax.experimental import pallas as pl
from jax.experimental.pallas import tpu as pltpu


def _sab_kernel(x_ref, wqkv_ref, bqkv_ref, wo_ref, bo_ref, o_ref,
                *, num_heads, dim_v, softmax_bf16):
    TB, N, Din = x_ref.shape            # static block shape
    rows = TB * N
    H = num_heads
    hd = dim_v // H

    # ---- fused Q|K|V projection: one lane-dense MXU matmul over all TB*N rows ----
    x = x_ref[...].reshape(rows, Din)                                    # bf16
    qkv = jnp.dot(x, wqkv_ref[...],
                  preferred_element_type=jnp.float32) + bqkv_ref[...]    # (rows, 3*Dv) f32

    q = qkv[:, :dim_v]                        # f32, unscaled (residual; K carries 1/sqrt(Dv))
    kv = qkv[:, dim_v:].astype(jnp.bfloat16)  # single bf16 cast of the K|V slab
    q_bf = q.astype(jnp.bfloat16)             # single bf16 cast of the Q slab (MXU operand)

    # heads -> batch dim (one cheap sublane transpose of rows*Dv elems); hd stays on lanes
    def split_heads(t):                       # (rows, c) -> (TB*H, N, c/H)
        c = t.shape[-1]
        return (t.reshape(TB, N, H, c // H)
                 .transpose(0, 2, 1, 3)
                 .reshape(TB * H, N, c // H))

    qh = split_heads(q_bf)                    # (TB*H, N, hd) bf16
    kh = split_heads(kv[:, :dim_v])           # (TB*H, N, hd) bf16, pre-scaled by 1/sqrt(Dv)
    vh = split_heads(kv[:, dim_v:])           # (TB*H, N, hd) bf16

    # ---- ONE batched attention across all TB*H heads ----
    s = jnp.einsum('bnd,bmd->bnm', qh, kh,
                   preferred_element_type=jnp.float32)                   # (TB*H, N, N) f32
    m = jnp.max(s, axis=-1, keepdims=True)                               # stable softmax
    if softmax_bf16:
        # v6e/v7x: packed bf16 EUP exp (~2x throughput), skips the pre-matmul P cast
        p = jnp.exp((s - m).astype(jnp.bfloat16))                        # bf16
        l = jnp.sum(p.astype(jnp.float32), axis=-1, keepdims=True)       # f32 row sums
        p_mm = p
    else:
        # v5e: no bf16 EUP/VPU -> keep the exponent path in f32
        p = jnp.exp(s - m)                                               # f32
        l = jnp.sum(p, axis=-1, keepdims=True)
        p_mm = p.astype(jnp.bfloat16)
    un = jnp.einsum('bnm,bmd->bnd', p_mm, vh,
                    preferred_element_type=jnp.float32)                  # unnormalized A@V
    inv_l = pl.reciprocal(l, approx=True)                                # EUP, deferred norm
    attn = un * inv_l                                                    # (TB*H, N, hd) f32

    # heads back to a lane-contiguous (rows, Dv) slab; residual add is lane-dense
    attn = (attn.reshape(TB, H, N, hd)
                .transpose(0, 2, 1, 3)
                .reshape(rows, dim_v))
    o = q + attn                                                         # f32

    # ---- output FF + residual on the flat (rows, Dv) slab:  O = O + relu(O Wo + bo) ----
    ff = jnp.dot(o.astype(jnp.bfloat16), wo_ref[...],
                 preferred_element_type=jnp.float32) + bo_ref[...]
    out = o + jnp.maximum(ff, 0.0)
    o_ref[...] = out.reshape(TB, N, dim_v).astype(o_ref.dtype)           # lane-dense store


def prepare_params(params, *, mxu_dtype=jnp.bfloat16):
    """One-time host-side: fuse Q|K|V weights, fold 1/sqrt(Dv) into K, cast to bf16."""
    dv = params["wq"].shape[1]
    scale = 1.0 / math.sqrt(dv)        # PyTorch MAB scales by sqrt(dim_V), not sqrt(head_dim)
    wqkv = jnp.concatenate([params["wq"], params["wk"] * scale, params["wv"]], axis=1)
    bqkv = jnp.concatenate([params["bq"], params["bk"] * scale, params["bv"]], axis=1)
    return dict(
        wqkv=wqkv.astype(mxu_dtype),
        bqkv=bqkv.astype(jnp.float32),          # biases added post-MXU in f32
        wo=params["wo"].astype(mxu_dtype),
        bo=params["bo"].astype(jnp.float32),
    )


def _tpu_generation():
    """Best-effort TPU generation from device_kind (e.g. 'TPU v6e' -> 6)."""
    try:
        kind = jax.devices()[0].device_kind.lower()
    except Exception:
        return 6
    for g in (7, 6, 5, 4, 3, 2):
        if f"v{g}" in kind:
            return g
    return 6


def _pick_block_b(B, N, Din, Dv, H, out_bytes, *, gen):
    """Largest divisor of B whose per-step VMEM footprint fits the generation's budget.

    On v7x (2 TensorCores) also keep grid >= 2 so dimension_semantics=('parallel',)
    can shard steps across both cores.
    """
    budget = (40 << 20) if gen >= 7 else (96 << 20)     # v7x: 64 MiB physical; else 128 MiB
    num_cores = 2 if gen >= 7 else 1
    # constant weights (worst-case double-buffered) + biases
    weight_bytes = 2 * ((Din * 3 * Dv + Dv * Dv) * 2 + (3 * Dv + Dv) * 4)

    def step_bytes(tb):
        rows = tb * N
        x_tile = 2 * rows * Din * 2                     # double-buffered bf16 input tile
        o_tile = 2 * rows * Dv * out_bytes              # double-buffered output tile
        qkv = rows * 3 * Dv * 4                         # f32 projection slab
        scores = 3 * tb * H * N * N * 4                 # s / p (+ headroom), f32
        slabs = 4 * rows * Dv * 4                       # q/attn/o/ff f32 headroom
        return weight_bytes + x_tile + o_tile + qkv + scores + slabs

    best = 1
    for tb in range(1, B + 1):
        if B % tb:
            continue
        if tb > 1 and B // tb < num_cores:              # keep >=2 grid steps on multi-TC chips
            continue
        if step_bytes(tb) <= budget:
            best = tb
    return best


def sab_forward(x, prepped, num_heads, *, block_b=None, out_dtype=jnp.bfloat16,
                softmax_bf16=None):
    B, N, Din = x.shape
    Dv = prepped["wo"].shape[0]
    assert Dv % num_heads == 0
    H = num_heads
    hd = Dv // H

    gen = _tpu_generation()
    if softmax_bf16 is None:
        softmax_bf16 = gen >= 6                         # bf16 EUP exp on v6e/v7x only
    out_bytes = jnp.dtype(out_dtype).itemsize

    if block_b is None:
        block_b = _pick_block_b(B, N, Din, Dv, H, out_bytes, gen=gen)
    assert B % block_b == 0
    grid = (B // block_b,)

    kernel = functools.partial(_sab_kernel, num_heads=H, dim_v=Dv,
                               softmax_bf16=softmax_bf16)

    # constant-index weights: single-buffer them (VMEM headroom, esp. v7x's 64 MiB)
    def const_spec(shape):
        idx = lambda b: (0,) * len(shape)
        try:
            return pl.BlockSpec(shape, idx, pipeline_mode=pl.Buffered(1))
        except TypeError:                                # older jax without pipeline_mode
            return pl.BlockSpec(shape, idx)

    rows_total = B * N
    cost = pl.CostEstimate(
        flops=(2 * rows_total * Din * 3 * Dv            # fused QKV projection
               + 2 * 2 * B * H * N * N * hd             # scores + A@V
               + 2 * rows_total * Dv * Dv),             # output FF
        transcendentals=B * H * N * N,                  # softmax exp
        bytes_accessed=(rows_total * Din * 2            # X (bf16)
                        + (Din * 3 * Dv + Dv * Dv) * 2 + 4 * Dv * 4   # weights + biases
                        + rows_total * Dv * out_bytes),               # output
    )

    vmem_limit = (48 << 20) if gen >= 7 else (96 << 20)

    return pl.pallas_call(
        kernel,
        out_shape=jax.ShapeDtypeStruct((B, N, Dv), out_dtype),
        grid=grid,
        in_specs=[
            pl.BlockSpec((block_b, N, Din), lambda b: (b, 0, 0)),   # X tile (bf16)
            const_spec((Din, 3 * Dv)),                              # fused Wq|Wk|Wv (bf16)
            const_spec((1, 3 * Dv)),                                # fused bq|bk|bv (f32)
            const_spec((Dv, Dv)),                                   # Wo (bf16)
            const_spec((1, Dv)),                                    # bo (f32)
        ],
        out_specs=pl.BlockSpec((block_b, N, Dv), lambda b: (b, 0, 0)),
        compiler_params=pltpu.CompilerParams(
            dimension_semantics=("parallel",),
            vmem_limit_bytes=vmem_limit),
        cost_estimate=cost,
    )(x.astype(jnp.bfloat16), prepped["wqkv"], prepped["bqkv"],
      prepped["wo"], prepped["bo"])


def sab_reference(x, params, num_heads):
    # Pure-JAX (f32) reproduction of the PyTorch MAB.forward (ln=False) for verification.
    q = x @ params["wq"] + params["bq"][0]
    k = x @ params["wk"] + params["bk"][0]
    v = x @ params["wv"] + params["bv"][0]
    Dv = q.shape[-1]
    q_ = jnp.concatenate(jnp.split(q, num_heads, axis=2), axis=0)
    k_ = jnp.concatenate(jnp.split(k, num_heads, axis=2), axis=0)
    v_ = jnp.concatenate(jnp.split(v, num_heads, axis=2), axis=0)
    a = jax.nn.softmax(jnp.einsum("bnd,bmd->bnm", q_, k_) / math.sqrt(Dv), axis=2)
    o = q_ + jnp.einsum("bnm,bmd->bnd", a, v_)
    o = jnp.concatenate(jnp.split(o, num_heads, axis=0), axis=2)
    return o + jax.nn.relu(o @ params["wo"] + params["bo"][0])


def init_params(key, dim_in, dim_out):
    # Deterministic synthetic init (PyTorch nn.Linear-style uniform bounds), f32 master copy.
    ks = jax.random.split(key, 8)

    def lin(kw, kb, fan_in, fan_out):
        bound = 1.0 / math.sqrt(fan_in)
        w = jax.random.uniform(kw, (fan_in, fan_out), jnp.float32, -bound, bound)
        b = jax.random.uniform(kb, (1, fan_out), jnp.float32, -bound, bound)
        return w, b

    wq, bq = lin(ks[0], ks[1], dim_in, dim_out)
    wk, bk = lin(ks[2], ks[3], dim_in, dim_out)
    wv, bv = lin(ks[4], ks[5], dim_in, dim_out)
    wo, bo = lin(ks[6], ks[7], dim_out, dim_out)
    return dict(wq=wq, bq=bq, wk=wk, bk=bk, wv=wv, bv=bv, wo=wo, bo=bo)


if __name__ == "__main__":
    B, N, DIM_IN, DIM_OUT, NUM_HEADS = 2, 8, 32, 32, 4

    key = jax.random.PRNGKey(0)
    kx, kp = jax.random.split(key)
    x = jax.random.normal(kx, (B, N, DIM_IN), dtype=jnp.float32)
    params = init_params(kp, DIM_IN, DIM_OUT)
    prepped = prepare_params(params)            # one-time: fuse QKV, fold scale, bf16 cast

    out = sab_forward(x, prepped, NUM_HEADS)
    out = jax.block_until_ready(out)

    ref = sab_reference(x, params, NUM_HEADS)
    assert out.shape == (B, N, DIM_OUT)
    # Loose tolerance: bf16 MXU operands, bf16 output, (on v6e/v7x) bf16 exp, approx reciprocal.
    assert jnp.allclose(out.astype(jnp.float32), ref, atol=5e-2, rtol=5e-2), "mismatch vs reference"

    print("KERNEL_OK")
</pallas_src>

<mosaic_0001>
module attributes {stable_mosaic.version = 11 : i64} {
  func.func @_sab_kernel(%arg0: i32, %arg1: memref<2x8x32xbf16, #tpu.memory_space<vmem>>, %arg2: memref<32x96xbf16, #tpu.memory_space<vmem>>, %arg3: memref<1x96xf32, #tpu.memory_space<vmem>>, %arg4: memref<32x32xbf16, #tpu.memory_space<vmem>>, %arg5: memref<1x32xf32, #tpu.memory_space<vmem>>, %arg6: memref<2x8x32xbf16, #tpu.memory_space<vmem>>) attributes {dimension_semantics = [#tpu.dimension_semantics<parallel>], iteration_bounds = array<i64: 1>, scalar_prefetch = 0 : i64, scratch_operands = 0 : i64, tpu.core_type = #tpu.core_type<tc>, window_params = [{transform_indices = @transform_0, window_bounds = array<i64: 2, 8, 32>}, {pipeline_mode = #tpu.pipeline_mode<synchronous>, transform_indices = @transform_1, window_bounds = array<i64: 32, 96>}, {pipeline_mode = #tpu.pipeline_mode<synchronous>, transform_indices = @transform_2, window_bounds = array<i64: 1, 96>}, {pipeline_mode = #tpu.pipeline_mode<synchronous>, transform_indices = @transform_3, window_bounds = array<i64: 32, 32>}, {pipeline_mode = #tpu.pipeline_mode<synchronous>, transform_indices = @transform_4, window_bounds = array<i64: 1, 32>}, {transform_indices = @transform_5, window_bounds = array<i64: 2, 8, 32>}]} {
    %c0 = arith.constant 0 : index
    %c0_0 = arith.constant 0 : index
    %c0_1 = arith.constant 0 : index
    %0 = vector.load %arg1[%c0, %c0_0, %c0_1] : memref<2x8x32xbf16, #tpu.memory_space<vmem>>, vector<2x8x32xbf16>
    %1 = vector.shape_cast %0 : vector<2x8x32xbf16> to vector<16x32xbf16>
    %c0_2 = arith.constant 0 : index
    %c0_3 = arith.constant 0 : index
    %2 = vector.load %arg2[%c0_2, %c0_3] : memref<32x96xbf16, #tpu.memory_space<vmem>>, vector<32x96xbf16>
    %cst = arith.constant dense<0.000000e+00> : vector<16x96xf32>
    %3 = tpu.matmul %1, %2, %cst {dimension_numbers = #tpu.dot_dimension_numbers<[1], [0], [0], [1], [0, 0, 1, 1], [], []>} : vector<16x32xbf16>, vector<32x96xbf16>, vector<16x96xf32> -> vector<16x96xf32>
    %c0_4 = arith.constant 0 : index
    %c0_5 = arith.constant 0 : index
    %4 = vector.load %arg3[%c0_4, %c0_5] : memref<1x96xf32, #tpu.memory_space<vmem>>, vector<1x96xf32>
    %5 = vector.broadcast %4 : vector<1x96xf32> to vector<16x96xf32>
    %6 = arith.addf %3, %5 : vector<16x96xf32>
    %7 = vector.extract_strided_slice %6 {offsets = [0, 0], sizes = [16, 32], strides = [1, 1]} : vector<16x96xf32> to vector<16x32xf32>
    %8 = vector.extract_strided_slice %6 {offsets = [0, 32], sizes = [16, 64], strides = [1, 1]} : vector<16x96xf32> to vector<16x64xf32>
    %9 = arith.truncf %8 : vector<16x64xf32> to vector<16x64xbf16>
    %10 = arith.truncf %7 : vector<16x32xf32> to vector<16x32xbf16>
    %11 = vector.shape_cast %10 : vector<16x32xbf16> to vector<2x8x4x8xbf16>
    %12 = tpu.transpose %11, [0, 2, 1, 3] : vector<2x8x4x8xbf16> -> vector<2x4x8x8xbf16>
    %13 = vector.shape_cast %12 : vector<2x4x8x8xbf16> to vector<8x8x8xbf16>
    %14 = vector.extract_strided_slice %9 {offsets = [0, 0], sizes = [16, 32], strides = [1, 1]} : vector<16x64xbf16> to vector<16x32xbf16>
    %15 = vector.shape_cast %14 : vector<16x32xbf16> to vector<2x8x4x8xbf16>
    %16 = tpu.transpose %15, [0, 2, 1, 3] : vector<2x8x4x8xbf16> -> vector<2x4x8x8xbf16>
    %17 = vector.shape_cast %16 : vector<2x4x8x8xbf16> to vector<8x8x8xbf16>
    %18 = vector.extract_strided_slice %9 {offsets = [0, 32], sizes = [16, 32], strides = [1, 1]} : vector<16x64xbf16> to vector<16x32xbf16>
    %19 = vector.shape_cast %18 : vector<16x32xbf16> to vector<2x8x4x8xbf16>
    %20 = tpu.transpose %19, [0, 2, 1, 3] : vector<2x8x4x8xbf16> -> vector<2x4x8x8xbf16>
    %21 = vector.shape_cast %20 : vector<2x4x8x8xbf16> to vector<8x8x8xbf16>
    "tpu.trace_start"() <{level = 10 : i32, message = "bnd,bmd->bnm"}> : () -> ()
    %cst_6 = arith.constant dense<0.000000e+00> : vector<8x8x8xf32>
    %22 = tpu.matmul %13, %17, %cst_6 {dimension_numbers = #tpu.dot_dimension_numbers<[2], [2], [1], [1], [0, 0, 0, 1, 1, 1], [0], [0]>} : vector<8x8x8xbf16>, vector<8x8x8xbf16>, vector<8x8x8xf32> -> vector<8x8x8xf32>
    "tpu.trace_stop"() : () -> ()
    %cst_7 = arith.constant dense<0xFF800000> : vector<8x8xf32>
    %23 = vector.multi_reduction <maximumf>, %22, %cst_7 [2] : vector<8x8x8xf32> to vector<8x8xf32>
    %24 = vector.shape_cast %23 : vector<8x8xf32> to vector<8x8x1xf32>
    %25 = vector.broadcast %24 : vector<8x8x1xf32> to vector<8x8x8xf32>
    %26 = arith.subf %22, %25 : vector<8x8x8xf32>
    %27 = arith.truncf %26 : vector<8x8x8xf32> to vector<8x8x8xbf16>
    %28 = math.exp %27 : vector<8x8x8xbf16>
    %29 = arith.extf %28 : vector<8x8x8xbf16> to vector<8x8x8xf32>
    %cst_8 = arith.constant dense<0.000000e+00> : vector<8x8xf32>
    %30 = vector.multi_reduction <add>, %29, %cst_8 [2] : vector<8x8x8xf32> to vector<8x8xf32>
    %31 = vector.shape_cast %30 : vector<8x8xf32> to vector<8x8x1xf32>
    "tpu.trace_start"() <{level = 10 : i32, message = "bnm,bmd->bnd"}> : () -> ()
    %cst_9 = arith.constant dense<0.000000e+00> : vector<8x8x8xf32>
    %32 = tpu.matmul %28, %21, %cst_9 {dimension_numbers = #tpu.dot_dimension_numbers<[2], [1], [1], [2], [0, 0, 0, 1, 1, 2], [0], [0]>} : vector<8x8x8xbf16>, vector<8x8x8xbf16>, vector<8x8x8xf32> -> vector<8x8x8xf32>
    "tpu.trace_stop"() : () -> ()
    %33 = tpu.reciprocal %31 {approx = true} : vector<8x8x1xf32> -> vector<8x8x1xf32>
    %34 = vector.broadcast %33 : vector<8x8x1xf32> to vector<8x8x8xf32>
    %35 = arith.mulf %32, %34 : vector<8x8x8xf32>
    %36 = vector.shape_cast %35 : vector<8x8x8xf32> to vector<2x4x8x8xf32>
    %37 = tpu.transpose %36, [0, 2, 1, 3] : vector<2x4x8x8xf32> -> vector<2x8x4x8xf32>
    %38 = vector.shape_cast %37 : vector<2x8x4x8xf32> to vector<16x32xf32>
    %39 = arith.addf %7, %38 : vector<16x32xf32>
    %40 = arith.truncf %39 : vector<16x32xf32> to vector<16x32xbf16>
    %c0_10 = arith.constant 0 : index
    %c0_11 = arith.constant 0 : index
    %41 = vector.load %arg4[%c0_10, %c0_11] : memref<32x32xbf16, #tpu.memory_space<vmem>>, vector<32x32xbf16>
    %cst_12 = arith.constant dense<0.000000e+00> : vector<16x32xf32>
    %42 = tpu.matmul %40, %41, %cst_12 {dimension_numbers = #tpu.dot_dimension_numbers<[1], [0], [0], [1], [0, 0, 1, 1], [], []>} : vector<16x32xbf16>, vector<32x32xbf16>, vector<16x32xf32> -> vector<16x32xf32>
    %c0_13 = arith.constant 0 : index
    %c0_14 = arith.constant 0 : index
    %43 = vector.load %arg5[%c0_13, %c0_14] : memref<1x32xf32, #tpu.memory_space<vmem>>, vector<1x32xf32>
    %44 = vector.broadcast %43 : vector<1x32xf32> to vector<16x32xf32>
    %45 = arith.addf %42, %44 : vector<16x32xf32>
    %cst_15 = arith.constant 0.000000e+00 : f32
    %46 = vector.broadcast %cst_15 : f32 to vector<16x32xf32>
    %47 = arith.maximumf %45, %46 : vector<16x32xf32>
    %48 = arith.addf %39, %47 : vector<16x32xf32>
    %49 = vector.shape_cast %48 : vector<16x32xf32> to vector<2x8x32xf32>
    %50 = arith.truncf %49 : vector<2x8x32xf32> to vector<2x8x32xbf16>
    %c0_16 = arith.constant 0 : index
    %c0_17 = arith.constant 0 : index
    %c0_18 = arith.constant 0 : index
    %51 = vector.load %arg6[%c0_16, %c0_17, %c0_18] : memref<2x8x32xbf16, #tpu.memory_space<vmem>>, vector<2x8x32xbf16>
    tpu.vector_store %arg6[%c0_16, %c0_17, %c0_18], %50 {strides = array<i32>} : memref<2x8x32xbf16, #tpu.memory_space<vmem>>, vector<2x8x32xbf16>,
    return
  }
  func.func @transform_0(%arg0: i32) -> (i32, i32, i32) {
    %c0_i32 = arith.constant 0 : i32
    %c0_i32_0 = arith.constant 0 : i32
    %c0_i32_1 = arith.constant 0 : i32
    return %arg0, %c0_i32, %c0_i32_0 : i32, i32, i32
  }
  func.func @transform_1(%arg0: i32) -> (i32, i32) {
    %c0_i32 = arith.constant 0 : i32
    %c0_i32_0 = arith.constant 0 : i32
    %c0_i32_1 = arith.constant 0 : i32
    return %c0_i32, %c0_i32_0 : i32, i32
  }
  func.func @transform_2(%arg0: i32) -> (i32, i32) {
    %c0_i32 = arith.constant 0 : i32
    %c0_i32_0 = arith.constant 0 : i32
    %c0_i32_1 = arith.constant 0 : i32
    return %c0_i32, %c0_i32_0 : i32, i32
  }
  func.func @transform_3(%arg0: i32) -> (i32, i32) {
    %c0_i32 = arith.constant 0 : i32
    %c0_i32_0 = arith.constant 0 : i32
    %c0_i32_1 = arith.constant 0 : i32
    return %c0_i32, %c0_i32_0 : i32, i32
  }
  func.func @transform_4(%arg0: i32) -> (i32, i32) {
    %c0_i32 = arith.constant 0 : i32
    %c0_i32_0 = arith.constant 0 : i32
    %c0_i32_1 = arith.constant 0 : i32
    return %c0_i32, %c0_i32_0 : i32, i32
  }
  func.func @transform_5(%arg0: i32) -> (i32, i32, i32) {
    %c0_i32 = arith.constant 0 : i32
    %c0_i32_0 = arith.constant 0 : i32
    %c0_i32_1 = arith.constant 0 : i32
    return %arg0, %c0_i32, %c0_i32_0 : i32, i32, i32
  }
}

</mosaic_0001>

<bundles_post_ra>
// kernel: tpu_custom_call.1
= control target key start
LH: loop header
LB: loop body
LE: loop exit
PB: predicated region body
PF: predicated region fallthrough
CT: control target
= control target key end

     0   :  { %10 = vsyncpa [#allocation3], 0  ;;  %s3128_s0 = inlined_call_operand.hbm [shape: bf16[2,8,32], index: 0, kind: input, shape index: {}]   ;;  %s3129_s1 = inlined_call_operand.hbm [shape: bf16[32,96], index: 1, kind: input, shape index: {}]   ;;  %s3130_s2 = inlined_call_operand.hbm [shape: f32[1,96], index: 2, kind: input, shape index: {}]   ;;  %s3131_s3 = inlined_call_operand.hbm [shape: bf16[32,32], index: 3, kind: input, shape index: {}]   ;;  %s3132_s4 = inlined_call_operand.hbm [shape: f32[1,32], index: 4, kind: input, shape index: {}]   ;;  %s3133_s5 = inlined_call_operand.hbm [shape: bf16[2,8,32], index: 5, kind: output, shape index: {}]  }
   0x1   :  { %11 = vsyncpa [#allocation6], 0 }
   0x2   :  { %12 = vsyncpa [#allocation9], 0 }
   0x3   :  { %13 = vsyncpa [#allocation4], 0  ;;  %s2647_s18 = smov [#allocation5]   ;;  %s2648_s20 = smov [#allocation8]  }
   0x4   :  { %s31_s19 = sshll.u32 %s2647_s18, 4  ;;  %s53_s21 = sshll.u32 %s2648_s20, 4  ;;  %s32_s19 = int_to_ptr.vmem [resolvable:$true] %s31_s19  ;;  %s2697_s21 = int_to_ptr.vmem [resolvable:$true] %s53_s21 }
   0x5   :  { %s2507_s24 = scalar_lea.hbm %s3129_s1, 256 }
   0x6   :  { %p2508_p0 = scmp.ne.s32.totalorder %s3129_s1, %s2507_s24  ;;  %p2511_p1 = scmp.lt.u32.totalorder %s2507_s24, %s3129_s1 }
   0x8   :  { %p2513_p2 = pnand %p2511_p1, %p2508_p0 }
   0xa   :  { %2516 = shalt.err (!%p2513_p2)
}
   0xb   :  { %s2517_s29 = scalar_lea.vmem %s32_s19, 256  ;;  %p2522_p4 = scmp.lt.s32.totalorder %s32_s19, %s32_s19 }
   0xc   :  { %p2518_p3 = scmp.ne.s32.totalorder %s32_s19, %s2517_s29  ;;  %p2523_p5 = scmp.lt.s32.totalorder %s2517_s29, %s2517_s29 }
   0xe   :  { %p2524_p6 = por %p2523_p5, %p2522_p4 }
  0x10   :  { %p2525_p7 = pnand %p2524_p6, %p2518_p3 }
  0x12   :  { %2528 = shalt.err (!%p2525_p7)
}
  0x13   :  { %s2649_s30 = smov 64   ;;  %s2650_s6 = smov 4  }
  0x14   :  { %37 = dma.hbm_to_vmem [thread:$0]  %s3129_s1, 256, %s32_s19, [#allocation6], %s2649_s30, %s2649_s30, %s2650_s6  }
  0x15   :  { %s2529_s11 = scalar_lea.hbm %s3131_s3, 256 }
  0x16   :  { %p2530_p8 = scmp.ne.s32.totalorder %s3131_s3, %s2529_s11  ;;  %p2533_p9 = scmp.lt.u32.totalorder %s2529_s11, %s3131_s3 }
  0x18   :  { %p2535_p10 = pnand %p2533_p9, %p2530_p8 }
  0x1a   :  { %2538 = shalt.err (!%p2535_p10)
}
  0x1b   :  { %s2539_s16 = scalar_lea.vmem %s2697_s21, 256  ;;  %p2544_p12 = scmp.lt.s32.totalorder %s2697_s21, %s2697_s21 }
  0x1c   :  { %p2540_p11 = scmp.ne.s32.totalorder %s2697_s21, %s2539_s16  ;;  %p2545_p13 = scmp.lt.s32.totalorder %s2539_s16, %s2539_s16 }
  0x1e   :  { %p2546_p0 = por %p2545_p13, %p2544_p12 }
  0x20   :  { %p2547_p1 = pnand %p2546_p0, %p2540_p11 }
  0x22   :  { %2550 = shalt.err (!%p2547_p1)
}
  0x23   :  { %59 = dma.hbm_to_vmem [thread:$0]  %s3131_s3, 256, %s2697_s21, [#allocation9], %s2649_s30, %s2649_s30, %s2650_s6  }
  0x24   :  { %s2651_s18 = smov [#allocation2]   ;;  %s2652_s20 = smov [#allocation7]  }
  0x25   :  { %s19_s19 = sshll.u32 %s2651_s18, 4  ;;  %s44_s22 = sshll.u32 %s2652_s20, 4  ;;  %s20_s19 = int_to_ptr.vmem [resolvable:$true] %s19_s19  ;;  %s45_s22 = int_to_ptr.vmem [resolvable:$true] %s44_s22 }
  0x26   :  { %s2551_s25 = scalar_lea.hbm %s3128_s0, 128 }
  0x27   :  { %p2552_p2 = scmp.ne.s32.totalorder %s3128_s0, %s2551_s25  ;;  %p2555_p3 = scmp.lt.u32.totalorder %s2551_s25, %s3128_s0 }
  0x29   :  { %p2557_p4 = pnand %p2555_p3, %p2552_p2 }
  0x2b   :  { %2560 = shalt.err (!%p2557_p4)
}
  0x2c   :  { %s2561_s3 = scalar_lea.vmem %s20_s19, 128  ;;  %p2566_p6 = scmp.lt.s32.totalorder %s20_s19, %s20_s19 }
  0x2d   :  { %p2562_p5 = scmp.ne.s32.totalorder %s20_s19, %s2561_s3  ;;  %p2567_p7 = scmp.lt.s32.totalorder %s2561_s3, %s2561_s3 }
  0x2f   :  { %p2568_p8 = por %p2567_p7, %p2566_p6 }
  0x31   :  { %p2569_p9 = pnand %p2568_p8, %p2562_p5 }
  0x33   :  { %2572 = shalt.err (!%p2569_p9)
}
  0x34   :  { %25 = dma.hbm_to_vmem [thread:$0]  %s3128_s0, 128, %s20_s19, [#allocation3], %s2649_s30, %s2649_s30, %s2650_s6  }
  0x35   :  { %s2573_s10 = scalar_lea.hbm %s3130_s2, 16 }
  0x36   :  { %p2574_p10 = scmp.ne.s32.totalorder %s3130_s2, %s2573_s10  ;;  %p2577_p11 = scmp.lt.u32.totalorder %s2573_s10, %s3130_s2 }
  0x38   :  { %p2579_p12 = pnand %p2577_p11, %p2574_p10 }
  0x3a   :  { %2582 = shalt.err (!%p2579_p12)
}
  0x3b   :  { %s2583_s15 = scalar_lea.vmem %s45_s22, 16  ;;  %s2587_s16 = scalar_lea.vmem %s45_s22, 32 }
  0x3c   :  { %p2584_p13 = scmp.ne.s32.totalorder %s45_s22, %s2583_s15  ;;  %p2588_p0 = scmp.lt.s32.totalorder %s45_s22, %s45_s22 }
  0x3d   :  { %p2589_p1 = scmp.lt.s32.totalorder %s2587_s16, %s2583_s15 }
  0x3f   :  { %p2590_p2 = por %p2589_p1, %p2588_p0 }
  0x41   :  { %p2591_p3 = pnand %p2590_p2, %p2584_p13 }
  0x43   :  { %2594 = shalt.err (!%p2591_p3)
}
  0x44   :  { %47 = dma.hbm_to_vmem [thread:$0]  %s3130_s2, 16, %s45_s22, [#allocation6]  }
  0x45   :  { %s2653_s17 = smov [#allocation10]   ;;  %s2595_s23 = scalar_lea.hbm %s3132_s4, 16 }
  0x46   :  { %s66_s18 = sshll.u32 %s2653_s17, 4  ;;  %p2596_p4 = scmp.ne.s32.totalorder %s3132_s4, %s2595_s23  ;;  %s67_s18 = int_to_ptr.vmem [resolvable:$true] %s66_s18 }
  0x47   :  { %p2599_p5 = scmp.lt.u32.totalorder %s2595_s23, %s3132_s4 }
  0x49   :  { %p2601_p6 = pnand %p2599_p5, %p2596_p4 }
  0x4b   :  { %2604 = shalt.err (!%p2601_p6)
}
  0x4c   :  { %s2605_s28 = scalar_lea.vmem %s67_s18, 16  ;;  %s2609_s2 = scalar_lea.vmem %s67_s18, 32 }
  0x4d   :  { %p2606_p7 = scmp.ne.s32.totalorder %s67_s18, %s2605_s28  ;;  %p2610_p8 = scmp.lt.s32.totalorder %s67_s18, %s67_s18 }
  0x4e   :  { %p2611_p9 = scmp.lt.s32.totalorder %s2609_s2, %s2605_s28 }
  0x50   :  { %p2612_p10 = por %p2611_p9, %p2610_p8 }
  0x52   :  { %p2613_p11 = pnand %p2612_p10, %p2606_p7 }
  0x54   :  { %2616 = shalt.err (!%p2613_p11)
}
  0x55   :  { %69 = dma.hbm_to_vmem [thread:$0]  %s3132_s4, 16, %s67_s18, [#allocation9]  }
  0x56   :  { %2639 = dma.done.wait [#allocation3], 128  }
  0x57   :  { %2640 = vsyncadd [#allocation3], 4294967168 }
  0x58   :  { %2641 = dma.done.wait [#allocation6], 272  }
  0x59   :  { %2642 = vsyncadd [#allocation6], 4294967024 }
  0x5a   :  { %2643 = dma.done.wait [#allocation9], 272  }
  0x5b   :  { %2644 = vsyncadd [#allocation9], 4294967024  ;;  %v2654_v0 = vmov 0.0   ;;  %vm2655_vm0 = vmmov 0   ;;  %v2470_v1 = vld [vmem:[#allocation5] sm:$0xff]   ;;  %v2471_v2 = vld [vmem:[#allocation5 + $0x8] sm:$0xff]   ;;  %v195_v17 = vlaneseq }
  0x5c   :  { %2338 = vmatprep.subr.bf16.mxu0 %v2654_v0  ;;  %2342 = vmatprep.mubr.msk.bf16.mxu0 %vm2655_vm0, %v2654_v0  ;;  %v2472_v3 = vld [vmem:[#allocation2] sm:$0xff]   ;;  %vm116_vm1 = vcmask 261120   ;;  %v2259_v4 = vld [vmem:[#allocation7] ss:$0 sm:$0xff]  ;;  %s2656_s4 = smov 104   ;;  %s2657_s3 = smov 120  }
  0x5d   :  { %2346 = vmatprep.subr.bf16.mxu1 %v2654_v0  ;;  %2348 = vmatprep.mubr.msk.bf16.mxu1 %vm2655_vm0, %v2654_v0  ;;  %s2658_s21 = smov 96   ;;  %s2659_s7 = smov 112   ;;  %v2660_v15 = vmov 1983009808   ;;  %v196_v21 = vshrl.u32 %v195_v17, 7  ;;  %v2662_v43 = vmov 0  }
  0x5e   :  { %2339 = vmatpush3.bf16.msra.mxu0 %v2470_v1  ;;  %v193_v16 = vunpack.c.l.s4 %v2660_v15  ;;  %v2661_v27 = vmov 1934713408   ;;  %v2822_v44 = vpack.i.b16 %v2662_v43, %v2662_v43  ;;  %vm1007_vm2 = vcmask 64512   ;;  %s2663_s8 = smov 16   ;;  %s2664_s9 = smov 8  }
  0x5f   :  { %2340 = vmatprep.subr.bf16.mxu0 %v2654_v0  ;;  %v224_v28 = vunpack.c.l.s4 %v2661_v27  ;;  %vm1475_vm3 = vcmask 1043456   ;;  %s2665_s10 = smov 24   ;;  %vm2155_vm4 = vcmask 130048   ;;  %vm2158_vm5 = vcmask 195584   ;;  %s2666_s11 = smov [#allocation11]  }
  0x60   :  { %v194_v20 = vunpack.c.0.s8 %v193_v16  ;;  %vm2237_vm6 = vcmask 257024   ;;  %s2245_s12 = sshll.u32 %s2666_s11, 4  ;;  %s2246_s12 = int_to_ptr.vmem [resolvable:$true] %s2245_s12 }
  0x61   :  { %v225_v35 = vunpack.c.0.s8 %v224_v28  ;;  %s2617_s13 = scalar_lea.vmem %s2246_s12, 128  ;;  %p2622_p13 = scmp.lt.s32.totalorder %s2246_s12, %s2246_s12 }
  0x62   :  { %2341 = vmatpush3.bf16.msra.mxu0 %v2471_v2  ;;  %v2802_v25 = vsub.s32 %v194_v20, %v196_v21  ;;  %p2618_p12 = scmp.ne.s32.totalorder %s2246_s12, %s2617_s13  ;;  %p2623_p0 = scmp.lt.s32.totalorder %s2617_s13, %s2617_s13 }
  0x63   :  { %2352 = vmatprep.subr.bf16.mxu0 %v2654_v0  ;;  %v2824_v47 = vsub.s32 %v225_v35, %v196_v21 }
  0x64   :  { %p2624_p1 = por %p2623_p0, %p2622_p13 }
  0x65   :  { %2343 = vmatmul.mubr.msk.bf16.vlgmr.msra.gmra.mrb[0].mxu0 %vm116_vm1, %v2472_v3 }
  0x66   :  { %2354 = vmatprep.mubr.msk.bf16.mxu0 %vm2655_vm0, %v2654_v0  ;;  %p2625_p2 = pnand %p2624_p1, %p2618_p12 }
 0x138   :  { %v154_v5 = vpop.f32.mrb[0].mxu0 }
 0x139   :  { %v2344_v6 = vpop.f32.mrb[1].mxu0  ;;  %v2784_v8 = vadd.f32 %v2259_v4, %v154_v5 }
 0x13a   :  { %v157_v7 = vpop.f32.mrb[2].mxu0 }
 0x13b   :  { %v2786_v9 = vadd.f32 %v2259_v4, %v157_v7  ;;  %v2345_v10 = vpop.f32.mrb[3].mxu0 }
 0x13d   :  { %v161_v11 = vpack.c.bf16 %v2786_v9, %v2784_v8 }
 0x13f   :  { %167 = vrot.lane.b32.xlu1 %v161_v11, %s2656_s4  ;;  %163 = vrot.lane.b32.xlu0 %v161_v11, %s2657_s3  ;;  %v173_v23 = vshrl.u32 %v161_v11, 16 }
 0x143   :  { %447 = vrot.lane.b32.xlu1 %v161_v11, %s2658_s21  ;;  %165 = vrot.lane.b32.xlu0 %v161_v11, %s2659_s7 }
 0x1b1   :  { %v164_v12 = vpop.permute.xlu0 %163  ;;  %v2790_v13 = vpop.permute.xlu1 %167 }
 0x1b2   :  { %449 = vrot.lane.b32.xlu0 %v164_v12, %s2658_s21  ;;  %v182_v19 = vshrl.u32 %v2790_v13, 16  ;;  %v174_v22 = vshrl.u32 %v164_v12, 16  ;;  %v2810_v30 = vpack.i.b16 %v164_v12, %v161_v11 }
 0x1b4   :  { %v2804_v26 = vpack.i.b16 %v174_v22, %v173_v23  ;;  %v198_v38 = vrot.slane %v2810_v30, %v2802_v25  ;;  %v191_v61 = vcombine.high %v2810_v30, %v2822_v44 }
 0x1b5   :  { %v2792_v14 = vpop.permute.xlu0 %165  ;;  %v448_v32 = vpop.permute.xlu1 %447 }
 0x1b6   :  { %453 = vrot.lane.b32.xlu0 %v2790_v13, %s2658_s21  ;;  %451 = vrot.lane.b32.xlu1 %v2792_v14, %s2658_s21  ;;  %v181_v18 = vshrl.u32 %v2792_v14, 16  ;;  %v2808_v29 = vpack.i.b16 %v2790_v13, %v2792_v14  ;;  %v264_v34 = vrot.slane %v2804_v26, %v2802_v25  ;;  %v459_v39 = vshrl.u32 %v448_v32, 16 }
 0x1b8   :  { %v2800_v24 = vpack.i.b16 %v182_v19, %v181_v18  ;;  %v213_v36 = vrot.slane %v2808_v29, %v2802_v25 }
 0x1ba   :  { %727 = vrot.lane.b32.xlu0 %v161_v11, %s2649_s30  ;;  %729 = vrot.lane.b32.xlu1 %v164_v12, %s2649_s30  ;;  %v279_v31 = vrot.slane %v2800_v24, %v2802_v25  ;;  %v221_v48 = vcombine.low %v198_v38, %v213_v36  ;;  %v222_v53 = vcombine.high %v198_v38, %v213_v36 }
 0x1bb   :  { %v272_v63 = vcombine.high %v2800_v24, %v2822_v44 }
 0x1bc   :  { %v287_v40 = vcombine.low %v264_v34, %v279_v31  ;;  %v288_v41 = vcombine.high %v264_v34, %v279_v31  ;;  %v229_v62 = vrot.slane %v221_v48, %v2824_v47  ;;  %v236_v6 = vrot.slane %v222_v53, %v2824_v47 }
 0x1bd   :  { %v206_v34 = vcombine.high %v2808_v29, %v2822_v44 }
 0x1be   :  { %v295_v54 = vrot.slane %v287_v40, %v2824_v47  ;;  %v302_v55 = vrot.slane %v288_v41, %v2824_v47  ;;  %v323_v35 = vcombine.low %v229_v62, %v236_v6  ;;  %v2264_v36 = vcombine.high %v229_v62, %v236_v6 }
 0x1bf   :  { %v286_v41 = vrot.slane %v272_v63, %v2802_v25 }
 0x1c0   :  { %v348_v7 = vcombine.low %v295_v54, %v302_v55  ;;  %v2265_v12 = vcombine.high %v295_v54, %v302_v55  ;;  %v338_v54 = vrot.slane %v2264_v36, %v2802_v25 }
 0x224   :  { %v450_v33 = vpop.permute.xlu0 %449 }
 0x225   :  { %v460_v37 = vshrl.u32 %v450_v33, 16  ;;  %v457_v42 = vpack.i.b16 %v450_v33, %v448_v32  ;;  %v257_v33 = vcombine.high %v2804_v26, %v2822_v44 }
 0x227   :  { %v461_v49 = vpack.i.b16 %v460_v37, %v459_v39  ;;  %v471_v56 = vcombine.high %v457_v42, %v2822_v44  ;;  %v478_v57 = vrot.slane %v457_v42, %v2802_v25 }
 0x228   :  { %v452_v45 = vpop.permute.xlu1 %451  ;;  %v454_v46 = vpop.permute.xlu0 %453 }
 0x229   :  { %v467_v50 = vshrl.u32 %v452_v45, 16  ;;  %v465_v51 = vpack.i.b16 %v454_v46, %v452_v45  ;;  %v468_v52 = vshrl.u32 %v454_v46, 16  ;;  %v537_v1 = vcombine.high %v461_v49, %v2822_v44 }
 0x22a   :  { %v544_v10 = vrot.slane %v461_v49, %v2802_v25  ;;  %v485_v15 = vrot.slane %v471_v56, %v2802_v25  ;;  %v355_v45 = vrot.slane %v348_v7, %v2802_v25  ;;  %v363_v46 = vrot.slane %v2265_v12, %v2802_v25 }
 0x22b   :  { %v469_v58 = vpack.i.b16 %v468_v52, %v467_v50  ;;  %v486_v59 = vcombine.high %v465_v51, %v2822_v44  ;;  %v493_v60 = vrot.slane %v465_v51, %v2802_v25  ;;  %v551_v18 = vrot.slane %v537_v1, %v2802_v25 }
 0x22c   :  { %v271_v50 = vrot.slane %v257_v33, %v2802_v25  ;;  %v220_v51 = vrot.slane %v206_v34, %v2802_v25  ;;  %v330_v52 = vrot.slane %v323_v35, %v2802_v25 }
 0x22d   :  { %v500_v2 = vrot.slane %v486_v59, %v2802_v25  ;;  %v501_v3 = vcombine.low %v478_v57, %v493_v60  ;;  %v502_v4 = vcombine.high %v478_v57, %v493_v60  ;;  %v552_v5 = vcombine.high %v469_v58, %v2822_v44 }
 0x22e   :  { %v559_v11 = vrot.slane %v469_v58, %v2802_v25  ;;  %v205_v58 = vrot.slane %v191_v61, %v2802_v25  ;;  %v303_v59 = vcombine.low %v271_v50, %v286_v41  ;;  %v304_v62 = vcombine.high %v271_v50, %v286_v41 }
 0x22f   :  { %v509_v16 = vrot.slane %v501_v3, %v2824_v47  ;;  %v516_v17 = vrot.slane %v502_v4, %v2824_v47  ;;  %v566_v19 = vrot.slane %v552_v5, %v2802_v25  ;;  %v517_v22 = vcombine.low %v485_v15, %v500_v2 }
 0x230   :  { %v567_v20 = vcombine.low %v544_v10, %v559_v11  ;;  %v568_v21 = vcombine.high %v544_v10, %v559_v11  ;;  %v518_v23 = vcombine.high %v485_v15, %v500_v2  ;;  %v364_v2 = vcombine.low %v355_v45, %v363_v46 }
 0x231   :  { %v603_v24 = vcombine.low %v509_v16, %v516_v17  ;;  %v2268_v27 = vcombine.high %v509_v16, %v516_v17  ;;  %v583_v31 = vcombine.low %v551_v18, %v566_v19  ;;  %v584_v32 = vcombine.high %v551_v18, %v566_v19 }
 0x232   :  { %v575_v28 = vrot.slane %v567_v20, %v2824_v47  ;;  %v582_v30 = vrot.slane %v568_v21, %v2824_v47  ;;  %v525_v26 = vrot.slane %v517_v22, %v2824_v47  ;;  %v532_v29 = vrot.slane %v518_v23, %v2824_v47 }
 0x233   :  { %v591_v37 = vrot.slane %v583_v31, %v2824_v47  ;;  %v598_v38 = vrot.slane %v584_v32, %v2824_v47  ;;  %v610_v42 = vrot.slane %v603_v24, %v2802_v25  ;;  %v618_v48 = vrot.slane %v2268_v27, %v2802_v25 }
 0x234   :  { %v628_v39 = vcombine.low %v575_v28, %v582_v30  ;;  %v2269_v40 = vcombine.high %v575_v28, %v582_v30  ;;  %v653_v63 = vcombine.low %v525_v26, %v532_v29  ;;  %v237_v3 = vcombine.low %v205_v58, %v220_v51 }
 0x235   :  { %v678_v55 = vcombine.low %v591_v37, %v598_v38  ;;  %v2271_v56 = vcombine.high %v591_v37, %v598_v38  ;;  %v619_v57 = vcombine.low %v610_v42, %v618_v48  ;;  %v238_v4 = vcombine.high %v205_v58, %v220_v51 }
 0x236   :  { %v635_v49 = vrot.slane %v628_v39, %v2802_v25  ;;  %v643_v53 = vrot.slane %v2269_v40, %v2802_v25  ;;  %v2270_v5 = vcombine.high %v525_v26, %v532_v29  ;;  %v339_v7 = vcombine.low %v330_v52, %v338_v54 }
 0x237   :  { %v626_v1 = vrot.slane %v619_v57, %v2824_v47  ;;  %v685_v10 = vrot.slane %v678_v55, %v2802_v25  ;;  %v693_v11 = vrot.slane %v2271_v56, %v2802_v25  ;;  %v311_v17 = vrot.slane %v303_v59, %v2824_v47 }
 0x238   :  { %v644_v60 = vcombine.low %v635_v49, %v643_v53  ;;  %v318_v18 = vrot.slane %v304_v62, %v2824_v47  ;;  %v660_v19 = vrot.slane %v653_v63, %v2802_v25  ;;  %v371_v20 = vrot.slane %v364_v2, %v2824_v47 }
 0x239   :  { %v706_v61 = vshrl.u32 %v626_v1, 16  ;;  %v668_v21 = vrot.slane %v2270_v5, %v2802_v25  ;;  %v627_v24 = vcombine.high %v626_v1, %v2662_v43  ;;  %v245_v27 = vrot.slane %v237_v3, %v2824_v47 }
 0x23a   :  { %v651_v6 = vrot.slane %v644_v60, %v2824_v47  ;;  %v252_v28 = vrot.slane %v238_v4, %v2824_v47  ;;  %v346_v31 = vrot.slane %v339_v7, %v2824_v47  ;;  %v694_v33 = vcombine.low %v685_v10, %v693_v11 }
 0x23b   :  { %v398_v34 = vcombine.low %v311_v17, %v318_v18  ;;  %v2267_v35 = vcombine.high %v311_v17, %v318_v18  ;;  %v427_v37 = vshrl.u32 %v371_v20, 16  ;;  %v712_v38 = vshrl.u32 %v627_v24, 16 }
 0x23c   :  { %v705_v12 = vpack.i.b16 %v651_v6, %v626_v1  ;;  %v707_v15 = vshrl.u32 %v651_v6, 16  ;;  %v652_v16 = vcombine.high %v651_v6, %v2662_v43  ;;  %v669_v39 = vcombine.low %v660_v19, %v668_v21 }
 0x23d   :  { %v373_v40 = vcombine.low %v245_v27, %v252_v28  ;;  %v2266_v41 = vcombine.high %v245_v27, %v252_v28  ;;  %v425_v42 = vpack.i.b16 %v371_v20, %v346_v31  ;;  %v426_v45 = vshrl.u32 %v346_v31, 16 }
 0x23e   :  { %v1012_v22 = vsel %vm1007_vm2, %v705_v12, 0  ;;  %v708_v23 = vpack.i.b16 %v707_v15, %v706_v61  ;;  %v713_v32 = vshrl.u32 %v652_v16, 16  ;;  %v711_v36 = vpack.i.b16 %v652_v16, %v627_v24 }
 0x23f   :  { %2347 = vmatpush3.bf16.xpose.msra.mxu1 %v1012_v22  ;;  %v701_v26 = vrot.slane %v694_v33, %v2824_v47  ;;  %v405_v29 = vrot.slane %v398_v34, %v2802_v25  ;;  %v413_v48 = vrot.slane %v2267_v35, %v2802_v25  ;;  %v428_v50 = vpack.i.b16 %v427_v37, %v426_v45 }
 0x240   :  { %v1058_v30 = vsel %vm1007_vm2, %v708_v23, 0  ;;  %2358 = vmatprep.subr.bf16.mxu1 %v2654_v0  ;;  %v714_v46 = vpack.i.b16 %v713_v32, %v712_v38  ;;  %v1104_v49 = vsel %vm1007_vm2, %v711_v36, 0  ;;  %v372_v51 = vcombine.high %v371_v20, %v2662_v43 }
 0x241   :  { %2353 = vmatpush3.bf16.xpose.msra.mxu0 %v1058_v30  ;;  %v676_v52 = vrot.slane %v669_v39, %v2824_v47  ;;  %v380_v53 = vrot.slane %v373_v40, %v2802_v25  ;;  %v388_v54 = vrot.slane %v2266_v41, %v2802_v25  ;;  %v347_v56 = vcombine.high %v346_v31, %v2662_v43 }
 0x242   :  { %2364 = vmatprep.subr.bf16.mxu0 %v2654_v0  ;;  %v1150_v55 = vsel %vm1007_vm2, %v714_v46, 0  ;;  %v719_v57 = vshrl.u32 %v701_v26, 16  ;;  %v433_v59 = vshrl.u32 %v372_v51, 16  ;;  %v414_v62 = vcombine.low %v405_v29, %v413_v48 }
 0x243   :  { %v717_v58 = vpack.i.b16 %v701_v26, %v676_v52  ;;  %v718_v60 = vshrl.u32 %v676_v52, 16  ;;  %v389_v63 = vcombine.low %v380_v53, %v388_v54  ;;  %v431_v1 = vpack.i.b16 %v372_v51, %v347_v56 }
 0x244   :  { %v432_v2 = vshrl.u32 %v347_v56, 16  ;;  %v702_v4 = vcombine.high %v701_v26, %v2662_v43  ;;  %v421_v7 = vrot.slane %v414_v62, %v2824_v47  ;;  %v677_v10 = vcombine.high %v676_v52, %v2662_v43 }
 0x245   :  { %v720_v3 = vpack.i.b16 %v719_v57, %v718_v60  ;;  %v1196_v5 = vsel %vm1007_vm2, %v717_v58, 0  ;;  %v396_v12 = vrot.slane %v389_v63, %v2824_v47 }
 0x246   :  { %2349 = vmatmul.mubr.msk.bf16.vlgmr.msra.gmra.mrb[0].mxu1 %vm1007_vm2, %v425_v42  ;;  %v434_v6 = vpack.i.b16 %v433_v59, %v432_v2  ;;  %v725_v61 = vshrl.u32 %v702_v4, 16  ;;  %v723_v15 = vpack.i.b16 %v702_v4, %v677_v10  ;;  %v439_v16 = vshrl.u32 %v421_v7, 16 }
 0x247   :  { %2359 = vmatpush3.bf16.xpose.msra.mxu1 %v1104_v49  ;;  %2360 = vmatprep.mubr.msk.bf16.mxu1 %vm2655_vm0, %v2654_v0  ;;  %v1242_v11 = vsel %vm1007_vm2, %v720_v3, 0  ;;  %v724_v17 = vshrl.u32 %v677_v10, 16  ;;  %v437_v18 = vpack.i.b16 %v421_v7, %v396_v12  ;;  %v438_v19 = vshrl.u32 %v396_v12, 16 }
 0x248   :  { %2355 = vmatmul.mubr.msk.bf16.vlgmr.msra.gmra.mrb[4].mxu0 %vm1007_vm2, %v428_v50  ;;  %2370 = vmatprep.subr.bf16.mxu1 %v2654_v0  ;;  %v1288_v21 = vsel %vm1007_vm2, %v723_v15, 0  ;;  %v422_v23 = vcombine.high %v421_v7, %v2662_v43  ;;  %v397_v27 = vcombine.high %v396_v12, %v2662_v43  ;;  %v730_v12 = vpop.permute.xlu1 %729 }
 0x249   :  { %2365 = vmatpush3.bf16.xpose.msra.mxu0 %v1150_v55  ;;  %2366 = vmatprep.mubr.msk.bf16.mxu0 %vm2655_vm0, %v2654_v0  ;;  %v726_v20 = vpack.i.b16 %v725_v61, %v724_v17  ;;  %v440_v22 = vpack.i.b16 %v439_v16, %v438_v19  ;;  %v728_v61 = vpop.permute.xlu0 %727 }
 0x24a   :  { %2376 = vmatprep.subr.bf16.mxu0 %v2654_v0  ;;  %v445_v28 = vshrl.u32 %v422_v23, 16  ;;  %v443_v30 = vpack.i.b16 %v422_v23, %v397_v27  ;;  %v444_v31 = vshrl.u32 %v397_v27, 16  ;;  %v2968_v23 = vpack.i.b16 %v730_v12, %v728_v61 }
 0x24b   :  { %v1334_v24 = vsel %vm1007_vm2, %v726_v20, 0  ;;  %v740_v20 = vshrl.u32 %v730_v12, 16 }
 0x24c   :  { %v446_v32 = vpack.i.b16 %v445_v28, %v444_v31 }
 0x24e   :  { %2361 = vmatmul.mubr.msk.bf16.vlgmr.msra.gmra.mrb[4].mxu1 %vm1007_vm2, %v431_v1 }
 0x24f   :  { %2371 = vmatpush3.bf16.xpose.msra.mxu1 %v1196_v5  ;;  %2372 = vmatprep.mubr.msk.bf16.mxu1 %vm2655_vm0, %v2654_v0 }
 0x250   :  { %2367 = vmatmul.mubr.msk.bf16.vlgmr.msra.gmra.mrb[8].mxu0 %vm1007_vm2, %v434_v6  ;;  %2382 = vmatprep.subr.bf16.mxu1 %v2654_v0 }
 0x251   :  { %2377 = vmatpush3.bf16.xpose.msra.mxu0 %v1242_v11  ;;  %2378 = vmatprep.mubr.msk.bf16.mxu0 %vm2655_vm0, %v2654_v0 }
 0x252   :  { %2388 = vmatprep.subr.bf16.mxu0 %v2654_v0 }
 0x256   :  { %2373 = vmatmul.mubr.msk.bf16.vlgmr.msra.gmra.mrb[8].mxu1 %vm1007_vm2, %v437_v18 }
 0x257   :  { %2383 = vmatpush3.bf16.xpose.msra.mxu1 %v1288_v21  ;;  %2384 = vmatprep.mubr.msk.bf16.mxu1 %vm2655_vm0, %v2654_v0  ;;  %v739_v21 = vshrl.u32 %v728_v61, 16 }
 0x258   :  { %2379 = vmatmul.mubr.msk.bf16.vlgmr.msra.gmra.mrb[12].mxu0 %vm1007_vm2, %v440_v22  ;;  %2394 = vmatprep.subr.bf16.mxu1 %v2654_v0 }
 0x259   :  { %2389 = vmatpush3.bf16.xpose.msra.mxu0 %v1334_v24  ;;  %2390 = vmatprep.mubr.msk.bf16.mxu0 %vm2655_vm0, %v2654_v0 }
 0x25a   :  { %2400 = vmatprep.subr.bf16.mxu0 %v2654_v0 }
 0x25e   :  { %2385 = vmatmul.mubr.msk.bf16.vlgmr.msra.gmra.mrb[12].mxu1 %vm1007_vm2, %v443_v30 }
 0x25f   :  { %2396 = vmatprep.mubr.msk.bf16.mxu1 %vm2655_vm0, %v2654_v0 }
 0x260   :  { %2391 = vmatmul.mubr.msk.bf16.vlgmr.msra.gmra.mrb[16].mxu0 %vm1007_vm2, %v446_v32 }
 0x261   :  { %2402 = vmatprep.mubr.msk.bf16.mxu0 %vm2655_vm0, %v2654_v0 }
 0x319   :  { %v1048_v33 = vpop.f32.mrb[0].mxu1 }
 0x31a   :  { %v2350_v34 = vpop.f32.mrb[1].mxu1  ;;  %v1376_v35 = vsel %vm1007_vm2, %v1048_v33, -inf }
 0x31b   :  { %1377 = vmax.xlane.f32.xlu1 %v1376_v35  ;;  %v1051_v36 = vpop.f32.mrb[2].mxu1  ;;  %v1094_v37 = vpop.f32.mrb[4].mxu0  ;;  %v2972_v35 = vpack.i.b16 %v740_v20, %v739_v21 }
 0x31c   :  { %v2351_v38 = vpop.f32.mrb[3].mxu1  ;;  %v2356_v39 = vpop.f32.mrb[5].mxu0  ;;  %v1379_v40 = vsel %vm1007_vm2, %v1094_v37, -inf }
 0x31d   :  { %1380 = vmax.xlane.f32.xlu0 %v1379_v40  ;;  %v1097_v41 = vpop.f32.mrb[6].mxu0  ;;  %v824_v40 = vrot.slane %v2972_v35, %v2802_v25 }
 0x31e   :  { %v2357_v42 = vpop.f32.mrb[7].mxu0 }
 0x321   :  { %v2940_v45 = vpop.f32.mrb[4].mxu1 }
 0x322   :  { %v2362_v46 = vpop.f32.mrb[5].mxu1 }
 0x323   :  { %v1143_v26 = vpop.f32.mrb[6].mxu1  ;;  %v2942_v29 = vpop.f32.mrb[8].mxu0 }
 0x324   :  { %v2363_v48 = vpop.f32.mrb[7].mxu1  ;;  %v2368_v49 = vpop.f32.mrb[9].mxu0  ;;  %v1385_v6 = vsel %vm1007_vm2, %v2942_v29, -inf }
 0x325   :  { %v1189_v50 = vpop.f32.mrb[10].mxu0 }
 0x326   :  { %v2369_v51 = vpop.f32.mrb[11].mxu0 }
 0x329   :  { %v2944_v52 = vpop.f32.mrb[8].mxu1 }
 0x32a   :  { %v2374_v53 = vpop.f32.mrb[9].mxu1 }
 0x32b   :  { %v1235_v54 = vpop.f32.mrb[10].mxu1  ;;  %v2946_v55 = vpop.f32.mrb[12].mxu0 }
 0x32c   :  { %731 = vrot.lane.b32.xlu1 %v2792_v14, %s2649_s30  ;;  %v2375_v56 = vpop.f32.mrb[11].mxu1  ;;  %v2380_v57 = vpop.f32.mrb[13].mxu0  ;;  %v1382_v14 = vsel %vm1007_vm2, %v2940_v45, -inf  ;;  %v1391_v7 = vsel %vm1007_vm2, %v2946_v55, -inf }
 0x32d   :  { %v1281_v58 = vpop.f32.mrb[14].mxu0 }
 0x32e   :  { %v2381_v59 = vpop.f32.mrb[15].mxu0 }
 0x331   :  { %v2950_v60 = vpop.f32.mrb[12].mxu1 }
 0x332   :  { %v2386_v62 = vpop.f32.mrb[13].mxu1  ;;  %v1394_v11 = vsel %vm1007_vm2, %v2950_v60, -inf }
 0x333   :  { %v1327_v63 = vpop.f32.mrb[14].mxu1  ;;  %733 = vrot.lane.b32.xlu0 %v2790_v13, %s2649_s30  ;;  %v2954_v1 = vpop.f32.mrb[16].mxu0  ;;  %v1388_v13 = vsel %vm1007_vm2, %v2944_v52, -inf }
 0x334   :  { %v2387_v2 = vpop.f32.mrb[15].mxu1  ;;  %v2392_v3 = vpop.f32.mrb[17].mxu0  ;;  %v1397_v10 = vsel %vm1007_vm2, %v2954_v1, -inf }
 0x335   :  { %v1373_v4 = vpop.f32.mrb[18].mxu0 }
 0x336   :  { %v2393_v5 = vpop.f32.mrb[19].mxu0 }
 0x350   :  { %1383 = vmax.xlane.f32.xlu1 %v1382_v14 }
 0x352   :  { %1386 = vmax.xlane.f32.xlu0 %v1385_v6 }
 0x354   :  { %1392 = vmax.xlane.f32.xlu1 %v1391_v7 }
 0x356   :  { %1389 = vmax.xlane.f32.xlu0 %v1388_v13 }
 0x358   :  { %1398 = vmax.xlane.f32.xlu1 %v1397_v10 }
 0x35a   :  { %1395 = vmax.xlane.f32.xlu0 %v1394_v11 }
 0x3a8   :  { %v1378_v15 = vpop.xlane.xlu1 %1377 }
 0x3a9   :  { %v1400_v16 = vsub.f32 %v1048_v33, %v1378_v15  ;;  %v758_v33 = vrot.slane %v2968_v23, %v2802_v25 }
 0x3aa   :  { %v1381_v17 = vpop.xlane.xlu0 %1380 }
 0x3ab   :  { %v1408_v18 = vpack.c.bf16 %v1400_v16, %v1400_v16  ;;  %v1401_v19 = vsub.f32 %v1094_v37, %v1381_v17 }
 0x3ac   :  { %v732_v22 = vpop.permute.xlu1 %731 }
 0x3ad   :  { %v1417_v24 = vmul.bf16 1069105081, %v1408_v18  ;;  %v1409_v27 = vpack.c.bf16 %v1401_v19, %v1401_v19  ;;  %v747_v28 = vshrl.u32 %v732_v22, 16 }
 0x3ae   :  { %v734_v30 = vpop.permute.xlu0 %733 }
 0x3af   :  { %2475 = vpow.bf16 %v1417_v24  ;;  %v1420_v31 = vmul.bf16 1069105081, %v1409_v27  ;;  %v2970_v32 = vpack.i.b16 %v734_v30, %v732_v22  ;;  %v748_v34 = vshrl.u32 %v734_v30, 16 }
 0x3b1   :  { %2477 = vpow.bf16 %v1420_v31  ;;  %v2976_v36 = vpack.i.b16 %v748_v34, %v747_v28  ;;  %v773_v37 = vrot.slane %v2970_v32, %v2802_v25  ;;  %v817_v31 = vcombine.high %v2972_v35, %v2822_v44 }
 0x3b2   :  { %v766_v34 = vcombine.high %v2970_v32, %v2822_v44 }
 0x3b3   :  { %v781_v38 = vcombine.low %v758_v33, %v773_v37  ;;  %v782_v39 = vcombine.high %v758_v33, %v773_v37  ;;  %v839_v41 = vrot.slane %v2976_v36, %v2802_v25  ;;  %v832_v28 = vcombine.high %v2976_v36, %v2822_v44 }
 0x3b4   :  { %v751_v33 = vcombine.high %v2968_v23, %v2822_v44  ;;  %v831_v37 = vrot.slane %v817_v31, %v2802_v25 }
 0x3b5   :  { %v789_v42 = vrot.slane %v781_v38, %v2824_v47  ;;  %v796_v46 = vrot.slane %v782_v39, %v2824_v47  ;;  %v847_v26 = vcombine.low %v824_v40, %v839_v41  ;;  %v848_v48 = vcombine.high %v824_v40, %v839_v41 }
 0x3b6   :  { %v846_v36 = vrot.slane %v832_v28, %v2802_v25  ;;  %v780_v38 = vrot.slane %v766_v34, %v2802_v25  ;;  %v765_v35 = vrot.slane %v751_v33, %v2802_v25 }
 0x3b7   :  { %v883_v49 = vcombine.low %v789_v42, %v796_v46  ;;  %v2272_v50 = vcombine.high %v789_v42, %v796_v46  ;;  %v855_v51 = vrot.slane %v847_v26, %v2824_v47  ;;  %v862_v53 = vrot.slane %v848_v48, %v2824_v47 }
 0x3b8   :  { %v863_v39 = vcombine.low %v831_v37, %v846_v36  ;;  %v864_v40 = vcombine.high %v831_v37, %v846_v36  ;;  %v797_v32 = vcombine.low %v765_v35, %v780_v38  ;;  %v798_v41 = vcombine.high %v765_v35, %v780_v38 }
 0x3b9   :  { %v890_v54 = vrot.slane %v883_v49, %v2802_v25  ;;  %v898_v56 = vrot.slane %v2272_v50, %v2802_v25  ;;  %v908_v58 = vcombine.low %v855_v51, %v862_v53  ;;  %v2273_v59 = vcombine.high %v855_v51, %v862_v53 }
 0x3ba   :  { %v2476_v57 = vpop.eup %2475  ;;  %v871_v42 = vrot.slane %v863_v39, %v2824_v47  ;;  %v878_v46 = vrot.slane %v864_v40, %v2824_v47  ;;  %v805_v26 = vrot.slane %v797_v32, %v2824_v47  ;;  %v812_v44 = vrot.slane %v798_v41, %v2824_v47 }
 0x3bb   :  { %v1440_v62 = vunpack.c.l.bf16 %v2476_v57  ;;  %v899_v63 = vcombine.low %v890_v54, %v898_v56  ;;  %v915_v3 = vrot.slane %v908_v58, %v2802_v25  ;;  %v923_v4 = vrot.slane %v2273_v59, %v2802_v25 }
 0x3bc   :  { %v2478_v2 = vpop.eup %2477  ;;  %v958_v23 = vcombine.low %v871_v42, %v878_v46  ;;  %v2275_v48 = vcombine.high %v871_v42, %v878_v46  ;;  %v933_v49 = vcombine.low %v805_v26, %v812_v44  ;;  %v2274_v50 = vcombine.high %v805_v26, %v812_v44 }
 0x3bd   :  { %v1448_v5 = vsel %vm1007_vm2, %v1440_v62, 0.0  ;;  %v1441_v14 = vunpack.c.l.bf16 %v2478_v2  ;;  %v906_v6 = vrot.slane %v899_v63, %v2824_v47  ;;  %v924_v7 = vcombine.low %v915_v3, %v923_v4 }
 0x3be   :  { %1449 = vadd.xlane.f32.xlu0 %v1448_v5  ;;  %v965_v53 = vrot.slane %v958_v23, %v2802_v25  ;;  %v973_v54 = vrot.slane %v2275_v48, %v2802_v25  ;;  %v948_v58 = vrot.slane %v2274_v50, %v2802_v25 }
 0x3bf   :  { %v1451_v13 = vsel %vm1007_vm2, %v1441_v14, 0.0  ;;  %v907_v10 = vcombine.high %v906_v6, %v2662_v43  ;;  %v931_v11 = vrot.slane %v924_v7, %v2824_v47  ;;  %v986_v61 = vshrl.u32 %v906_v6, 16 }
 0x3c0   :  { %1452 = vadd.xlane.f32.xlu1 %v1451_v13  ;;  %v974_v3 = vcombine.low %v965_v53, %v973_v54 }
 0x3c1   :  { %v985_v12 = vpack.i.b16 %v931_v11, %v906_v6  ;;  %v987_v15 = vshrl.u32 %v931_v11, 16  ;;  %v932_v16 = vcombine.high %v931_v11, %v2662_v43  ;;  %v992_v17 = vshrl.u32 %v907_v10, 16 }
 0x3c3   :  { %v1477_v18 = vsel %vm1475_vm3, %v985_v12, 0  ;;  %v988_v19 = vpack.i.b16 %v987_v15, %v986_v61  ;;  %v991_v20 = vpack.i.b16 %v932_v16, %v907_v10  ;;  %v993_v21 = vshrl.u32 %v932_v16, 16 }
 0x3c4   :  { %2395 = vmatpush3.bf16.msra.mxu1 %v1477_v18  ;;  %v981_v12 = vrot.slane %v974_v3, %v2824_v47 }
 0x3c5   :  { %v1523_v22 = vsel %vm1475_vm3, %v988_v19, 0  ;;  %2406 = vmatprep.subr.bf16.mxu1 %v2654_v0  ;;  %v994_v24 = vpack.i.b16 %v993_v21, %v992_v17  ;;  %v1569_v27 = vsel %vm1475_vm3, %v991_v20, 0 }
 0x3c6   :  { %2401 = vmatpush3.bf16.msra.mxu0 %v1523_v22 }
 0x3c7   :  { %2397 = vmatmul.mubr.msk.bf16.vlgmr.msra.gmra.mrb[16].mxu1 %vm1007_vm2, %v2476_v57  ;;  %2412 = vmatprep.subr.bf16.mxu0 %v2654_v0  ;;  %v1615_v30 = vsel %vm1475_vm3, %v994_v24, 0  ;;  %v940_v57 = vrot.slane %v933_v49, %v2802_v25 }
 0x3c8   :  { %2407 = vmatpush3.bf16.msra.mxu1 %v1569_v27  ;;  %2408 = vmatprep.mubr.msk.bf16.mxu1 %vm2655_vm0, %v2654_v0 }
 0x3c9   :  { %2403 = vmatmul.mubr.msk.bf16.vlgmr.msra.gmra.mrb[20].mxu0 %vm1007_vm2, %v2478_v2  ;;  %2418 = vmatprep.subr.bf16.mxu1 %v2654_v0  ;;  %v949_v7 = vcombine.low %v940_v57, %v948_v58 }
 0x3ca   :  { %2413 = vmatpush3.bf16.msra.mxu0 %v1615_v30  ;;  %2414 = vmatprep.mubr.msk.bf16.mxu0 %vm2655_vm0, %v2654_v0 }
 0x3cb   :  { %2424 = vmatprep.subr.bf16.mxu0 %v2654_v0  ;;  %v956_v17 = vrot.slane %v949_v7, %v2824_v47 }
 0x3cd   :  { %v997_v24 = vpack.i.b16 %v981_v12, %v956_v17  ;;  %v998_v27 = vshrl.u32 %v956_v17, 16 }
 0x3cf   :  { %v1661_v31 = vsel %vm1475_vm3, %v997_v24, 0 }
 0x3dd   :  { %v1384_v51 = vpop.xlane.xlu1 %1383 }
 0x3de   :  { %v1402_v56 = vsub.f32 %v2940_v45, %v1384_v51 }
 0x3df   :  { %v1387_v59 = vpop.xlane.xlu0 %1386 }
 0x3e0   :  { %v1410_v62 = vpack.c.bf16 %v1402_v56, %v1402_v56  ;;  %v1403_v63 = vsub.f32 %v2942_v29, %v1387_v59 }
 0x3e1   :  { %v1393_v2 = vpop.xlane.xlu1 %1392 }
 0x3e2   :  { %v1423_v4 = vmul.bf16 1069105081, %v1410_v62  ;;  %v1411_v5 = vpack.c.bf16 %v1403_v63, %v1403_v63  ;;  %v1405_v14 = vsub.f32 %v2946_v55, %v1393_v2 }
 0x3e3   :  { %v1390_v6 = vpop.xlane.xlu0 %1389 }
 0x3e4   :  { %2479 = vpow.bf16 %v1423_v4  ;;  %v1426_v13 = vmul.bf16 1069105081, %v1411_v5  ;;  %v1413_v10 = vpack.c.bf16 %v1405_v14, %v1405_v14  ;;  %v1404_v45 = vsub.f32 %v2944_v52, %v1390_v6 }
 0x3e5   :  { %v1399_v11 = vpop.xlane.xlu1 %1398  ;;  %v999_v52 = vshrl.u32 %v981_v12, 16 }
 0x3e6   :  { %2481 = vpow.bf16 %v1426_v13  ;;  %v1432_v61 = vmul.bf16 1069105081, %v1413_v10  ;;  %v1412_v15 = vpack.c.bf16 %v1404_v45, %v1404_v45  ;;  %v1407_v29 = vsub.f32 %v2954_v1, %v1399_v11 }
 0x3e7   :  { %v1396_v16 = vpop.xlane.xlu0 %1395  ;;  %v1000_v28 = vpack.i.b16 %v999_v52, %v998_v27  ;;  %v982_v1 = vcombine.high %v981_v12, %v2662_v43 }
 0x3e8   :  { %2483 = vpow.bf16 %v1432_v61  ;;  %v1429_v55 = vmul.bf16 1069105081, %v1412_v15  ;;  %v1415_v18 = vpack.c.bf16 %v1407_v29, %v1407_v29  ;;  %v1406_v19 = vsub.f32 %v2950_v60, %v1396_v16 }
 0x3e9   :  { %v957_v60 = vcombine.high %v956_v17, %v2662_v43  ;;  %v1707_v36 = vsel %vm1475_vm3, %v1000_v28, 0  ;;  %v1005_v35 = vshrl.u32 %v982_v1, 16 }
 0x3ea   :  { %2485 = vpow.bf16 %v1429_v55  ;;  %v1438_v20 = vmul.bf16 1069105081, %v1415_v18  ;;  %v1414_v21 = vpack.c.bf16 %v1406_v19, %v1406_v19 }
 0x3eb   :  { %v1003_v40 = vpack.i.b16 %v982_v1, %v957_v60  ;;  %v1004_v32 = vshrl.u32 %v957_v60, 16 }
 0x3ec   :  { %2487 = vpow.bf16 %v1438_v20  ;;  %v1435_v22 = vmul.bf16 1069105081, %v1414_v21 }
 0x3ed   :  { %v1006_v26 = vpack.i.b16 %v1005_v35, %v1004_v32  ;;  %v1753_v23 = vsel %vm1475_vm3, %v1003_v40, 0 }
 0x3ee   :  { %2489 = vpow.bf16 %v1435_v22 }
 0x3ef   :  { %v2480_v30 = vpop.eup %2479  ;;  %v1799_v53 = vsel %vm1475_vm3, %v1006_v26, 0 }
 0x3f0   :  { %2409 = vmatmul.mubr.msk.bf16.vlgmr.msra.gmra.mrb[20].mxu1 %vm1007_vm2, %v2480_v30  ;;  %v1442_v34 = vunpack.c.l.bf16 %v2480_v30 }
 0x3f1   :  { %v2482_v33 = vpop.eup %2481  ;;  %2419 = vmatpush3.bf16.msra.mxu1 %v1661_v31  ;;  %2420 = vmatprep.mubr.msk.bf16.mxu1 %vm2655_vm0, %v2654_v0 }
 0x3f2   :  { %2415 = vmatmul.mubr.msk.bf16.vlgmr.msra.gmra.mrb[24].mxu0 %vm1007_vm2, %v2482_v33  ;;  %v1454_v37 = vsel %vm1007_vm2, %v1442_v34, 0.0  ;;  %v1443_v38 = vunpack.c.l.bf16 %v2482_v33  ;;  %2430 = vmatprep.subr.bf16.mxu1 %v2654_v0 }
 0x3f3   :  { %v2484_v39 = vpop.eup %2483  ;;  %2425 = vmatpush3.bf16.msra.mxu0 %v1707_v36  ;;  %1455 = vadd.xlane.f32.xlu0 %v1454_v37 }
 0x3f4   :  { %v1457_v43 = vsel %vm1007_vm2, %v1443_v38, 0.0  ;;  %2426 = vmatprep.mubr.msk.bf16.mxu0 %vm2655_vm0, %v2654_v0  ;;  %2436 = vmatprep.subr.bf16.mxu0 %v2654_v0  ;;  %v1445_v42 = vunpack.c.l.bf16 %v2484_v39 }
 0x3f5   :  { %v2486_v41 = vpop.eup %2485  ;;  %1458 = vadd.xlane.f32.xlu1 %v1457_v43 }
 0x3f6   :  { %v1444_v46 = vunpack.c.l.bf16 %v2486_v41  ;;  %v1463_v50 = vsel %vm1007_vm2, %v1445_v42, 0.0 }
 0x3f7   :  { %v2488_v44 = vpop.eup %2487 }
 0x3f8   :  { %2421 = vmatmul.mubr.msk.bf16.vlgmr.msra.gmra.mrb[24].mxu1 %vm1007_vm2, %v2486_v41  ;;  %v1460_v48 = vsel %vm1007_vm2, %v1444_v46, 0.0  ;;  %v1447_v51 = vunpack.c.l.bf16 %v2488_v44 }
 0x3f9   :  { %v2490_v49 = vpop.eup %2489  ;;  %2431 = vmatpush3.bf16.msra.mxu1 %v1753_v23  ;;  %1461 = vadd.xlane.f32.xlu0 %v1460_v48 }
 0x3fa   :  { %1464 = vadd.xlane.f32.xlu1 %v1463_v50  ;;  %2427 = vmatmul.mubr.msk.bf16.vlgmr.msra.gmra.mrb[28].mxu0 %vm1007_vm2, %v2484_v39  ;;  %v1446_v54 = vunpack.c.l.bf16 %v2490_v49  ;;  %v1469_v57 = vsel %vm1007_vm2, %v1447_v51, 0.0 }
 0x3fb   :  { %2437 = vmatpush3.bf16.msra.mxu0 %v1799_v53  ;;  %2432 = vmatprep.mubr.msk.bf16.mxu1 %vm2655_vm0, %v2654_v0 }
 0x3fc   :  { %v1466_v56 = vsel %vm1007_vm2, %v1446_v54, 0.0  ;;  %2438 = vmatprep.mubr.msk.bf16.mxu0 %vm2655_vm0, %v2654_v0  ;;  %2442 = vmatprep.subr.bf16.mxu1 %v2654_v0 }
 0x3fd   :  { %1467 = vadd.xlane.f32.xlu0 %v1466_v56 }
 0x3fe   :  { %1470 = vadd.xlane.f32.xlu1 %v1469_v57 }
 0x400   :  { %2433 = vmatmul.mubr.msk.bf16.vlgmr.msra.gmra.mrb[28].mxu1 %vm1007_vm2, %v2490_v49 }
 0x401   :  { %2446 = vmatprep.mubr.msk.bf16.mxu1 %vm2655_vm0, %v2654_v0 }
 0x402   :  { %2439 = vmatmul.mubr.msk.bf16.vlgmr.msra.gmra.mrb[32].mxu0 %vm1007_vm2, %v2488_v44 }
 0x44b   :  { %v1450_v14 = vpop.xlane.xlu0 %1449 }
 0x44c   :  { %2491 = vrcp.f32 %v1450_v14 }
 0x44d   :  { %v1453_v6 = vpop.xlane.xlu1 %1452 }
 0x456   :  { %v2492_v45 = vpop.eup %2491 }
 0x480   :  { %v1456_v7 = vpop.xlane.xlu0 %1455 }
 0x481   :  { %2493 = vrcp.f32 %v1456_v7 }
 0x482   :  { %v1459_v13 = vpop.xlane.xlu1 %1458  ;;  %2495 = vrcp.f32 %v1453_v6 }
 0x483   :  { %2497 = vrcp.f32 %v1459_v13 }
 0x486   :  { %v1462_v10 = vpop.xlane.xlu0 %1461 }
 0x487   :  { %v1465_v11 = vpop.xlane.xlu1 %1464  ;;  %2499 = vrcp.f32 %v1462_v10 }
 0x488   :  { %2501 = vrcp.f32 %v1465_v11 }
 0x48a   :  { %v1468_v29 = vpop.xlane.xlu0 %1467 }
 0x48b   :  { %v2494_v12 = vpop.eup %2493  ;;  %v1471_v30 = vpop.xlane.xlu1 %1470  ;;  %2503 = vrcp.f32 %v1468_v29 }
 0x48c   :  { %v2496_v15 = vpop.eup %2495  ;;  %2505 = vrcp.f32 %v1471_v30 }
 0x48d   :  { %v2498_v18 = vpop.eup %2497 }
 0x49a   :  { %v1513_v58 = vpop.f32.mrb[16].mxu1 }
 0x49b   :  { %v2398_v59 = vpop.f32.mrb[17].mxu1  ;;  %v1849_v16 = vmul.f32 %v2492_v45, %v1513_v58 }
 0x49c   :  { %v1516_v62 = vpop.f32.mrb[18].mxu1  ;;  %v1559_v63 = vpop.f32.mrb[20].mxu0 }
 0x49d   :  { %v2399_v2 = vpop.f32.mrb[19].mxu1  ;;  %v2404_v3 = vpop.f32.mrb[21].mxu0  ;;  %v1850_v21 = vmul.f32 %v2496_v15, %v1559_v63 }
 0x49e   :  { %v1562_v4 = vpop.f32.mrb[22].mxu0  ;;  %v2500_v59 = vpop.eup %2499 }
 0x49f   :  { %v2405_v5 = vpop.f32.mrb[23].mxu0  ;;  %v2502_v62 = vpop.eup %2501 }
 0x4a0   :  { %v2504_v5 = vpop.eup %2503 }
 0x4c3   :  { %v1605_v61 = vpop.f32.mrb[20].mxu1 }
 0x4c4   :  { %v1851_v17 = vmul.f32 %v2494_v12, %v1605_v61  ;;  %v2410_v55 = vpop.f32.mrb[21].mxu1  ;;  %v2506_v12 = vpop.eup %2505 }
 0x4c5   :  { %v1608_v19 = vpop.f32.mrb[22].mxu1  ;;  %v1651_v20 = vpop.f32.mrb[24].mxu0 }
 0x4c6   :  { %v1857_v52 = vcombine.low %v1849_v16, %v1851_v17  ;;  %v1858_v22 = vcombine.high %v1849_v16, %v1851_v17  ;;  %v1852_v24 = vmul.f32 %v2498_v18, %v1651_v20  ;;  %v2411_v27 = vpop.f32.mrb[23].mxu1  ;;  %v2416_v28 = vpop.f32.mrb[25].mxu0 }
 0x4c7   :  { %v1654_v1 = vpop.f32.mrb[26].mxu0 }
 0x4c8   :  { %v1873_v31 = vcombine.low %v1850_v21, %v1852_v24  ;;  %v1874_v34 = vcombine.high %v1850_v21, %v1852_v24  ;;  %v2417_v60 = vpop.f32.mrb[27].mxu0  ;;  %v1865_v33 = vrot.slane %v1857_v52, %v2802_v25  ;;  %v1872_v36 = vrot.slane %v1858_v22, %v2802_v25 }
 0x4ca   :  { %v1881_v37 = vrot.slane %v1873_v31, %v2802_v25  ;;  %v1888_v38 = vrot.slane %v1874_v34, %v2802_v25 }
 0x4cb   :  { %v1697_v35 = vpop.f32.mrb[24].mxu1 }
 0x4cc   :  { %v1889_v39 = vcombine.low %v1865_v33, %v1881_v37  ;;  %v1890_v43 = vcombine.high %v1865_v33, %v1881_v37  ;;  %v1905_v40 = vcombine.low %v1872_v36, %v1888_v38  ;;  %v1906_v32 = vcombine.high %v1872_v36, %v1888_v38  ;;  %v2422_v41 = vpop.f32.mrb[25].mxu1 }
 0x4cd   :  { %v1700_v42 = vpop.f32.mrb[26].mxu1  ;;  %v1743_v46 = vpop.f32.mrb[28].mxu0  ;;  %v1853_v14 = vmul.f32 %v2500_v59, %v1697_v35  ;;  %v2473_v41 = vld [vmem:[#allocation8] sm:$0xff]  }
 0x4ce   :  { %v1897_v26 = vrot.slane %v1889_v39, %v2824_v47  ;;  %v1904_v44 = vrot.slane %v1890_v43, %v2824_v47  ;;  %v1913_v23 = vrot.slane %v1905_v40, %v2824_v47  ;;  %v1920_v48 = vrot.slane %v1906_v32, %v2824_v47  ;;  %v2423_v49 = vpop.f32.mrb[27].mxu1  ;;  %v2428_v50 = vpop.f32.mrb[29].mxu0  ;;  %2443 = vmatpush3.bf16.msra.mxu1 %v2473_v41 }
 0x4cf   :  { %v1746_v51 = vpop.f32.mrb[30].mxu0  ;;  %v1854_v61 = vmul.f32 %v2502_v62, %v1743_v46  ;;  %2444 = vmatprep.subr.bf16.mxu1 %v2654_v0 }
 0x4d0   :  { %v1993_v53 = vcombine.low %v1897_v26, %v1904_v44  ;;  %v2292_v54 = vcombine.high %v1897_v26, %v1904_v44  ;;  %v2009_v56 = vcombine.low %v1913_v23, %v1920_v48  ;;  %v2293_v57 = vcombine.high %v1913_v23, %v1920_v48  ;;  %v2429_v58 = vpop.f32.mrb[31].mxu0 }
 0x4d2   :  { %v2000_v63 = vrot.slane %v1993_v53, %v2802_v25  ;;  %v2008_v2 = vrot.slane %v2292_v54, %v2802_v25  ;;  %v2016_v3 = vrot.slane %v2009_v56, %v2802_v25  ;;  %v2024_v4 = vrot.slane %v2293_v57, %v2802_v25  ;;  %v2474_v57 = vld [vmem:[#allocation8 + $0x8] sm:$0xff]  }
 0x4d3   :  { %v1789_v6 = vpop.f32.mrb[28].mxu1  ;;  %2445 = vmatpush3.bf16.msra.mxu1 %v2474_v57 }
 0x4d4   :  { %v1855_v7 = vmul.f32 %v2504_v5, %v1789_v6  ;;  %v2434_v13 = vpop.f32.mrb[29].mxu1  ;;  %v2026_v10 = vcombine.high %v2000_v63, %v2008_v2  ;;  %v2042_v45 = vcombine.high %v2016_v3, %v2024_v4  ;;  %v2025_v11 = vcombine.low %v2000_v63, %v2008_v2 }
 0x4d5   :  { %v1792_v15 = vpop.f32.mrb[30].mxu1  ;;  %v1835_v29 = vpop.f32.mrb[32].mxu0  ;;  %v2041_v16 = vcombine.low %v2016_v3, %v2024_v4 }
 0x4d6   :  { %v1925_v17 = vcombine.low %v1853_v14, %v1855_v7  ;;  %v1926_v55 = vcombine.high %v1853_v14, %v1855_v7  ;;  %v1856_v18 = vmul.f32 %v2506_v12, %v1835_v29  ;;  %v2435_v19 = vpop.f32.mrb[31].mxu1  ;;  %v2440_v20 = vpop.f32.mrb[33].mxu0  ;;  %v2040_v21 = vrot.slane %v2026_v10, %v2824_v47 }
 0x4d7   :  { %v1838_v52 = vpop.f32.mrb[34].mxu0  ;;  %v2056_v22 = vrot.slane %v2042_v45, %v2824_v47  ;;  %v2033_v24 = vrot.slane %v2025_v11, %v2824_v47  ;;  %v2049_v27 = vrot.slane %v2041_v16, %v2824_v47  ;;  %v2296_v20 = vld [vmem:[#allocation10] ss:$0 sm:$0xff] }
 0x4d8   :  { %v1941_v28 = vcombine.low %v1854_v61, %v1856_v18  ;;  %v1942_v1 = vcombine.high %v1854_v61, %v1856_v18  ;;  %v2441_v30 = vpop.f32.mrb[35].mxu0  ;;  %v1933_v36 = vrot.slane %v1925_v17, %v2802_v25  ;;  %v1940_v37 = vrot.slane %v1926_v55, %v2802_v25 }
 0x4d9   :  { %v2059_v31 = vcombine.low %v2040_v21, %v2056_v22  ;;  %v2058_v34 = vcombine.high %v2033_v24, %v2049_v27  ;;  %v2060_v60 = vcombine.high %v2040_v21, %v2056_v22  ;;  %v2057_v33 = vcombine.low %v2033_v24, %v2049_v27 }
 0x4da   :  { %v1949_v38 = vrot.slane %v1941_v28, %v2802_v25  ;;  %v1956_v35 = vrot.slane %v1942_v1, %v2802_v25 }
 0x4db   :  { %2139 = vrot.lane.b32.xlu1 %v2059_v31, %s2663_s8  ;;  %2131 = vrot.lane.b32.xlu0 %v2058_v34, %s2664_s9 }
 0x4dc   :  { %v1957_v39 = vcombine.low %v1933_v36, %v1949_v38  ;;  %v1958_v43 = vcombine.high %v1933_v36, %v1949_v38  ;;  %v1973_v40 = vcombine.low %v1940_v37, %v1956_v35  ;;  %v1974_v32 = vcombine.high %v1940_v37, %v1956_v35 }
 0x4de   :  { %v1965_v42 = vrot.slane %v1957_v39, %v2824_v47  ;;  %v1972_v46 = vrot.slane %v1958_v43, %v2824_v47  ;;  %v1981_v26 = vrot.slane %v1973_v40, %v2824_v47  ;;  %v1988_v44 = vrot.slane %v1974_v32, %v2824_v47 }
 0x4e0   :  { %v2061_v23 = vcombine.low %v1965_v42, %v1972_v46  ;;  %v2294_v48 = vcombine.high %v1965_v42, %v1972_v46  ;;  %v2077_v49 = vcombine.low %v1981_v26, %v1988_v44  ;;  %v2295_v50 = vcombine.high %v1981_v26, %v1988_v44 }
 0x4e2   :  { %v2068_v51 = vrot.slane %v2061_v23, %v2802_v25  ;;  %v2076_v53 = vrot.slane %v2294_v48, %v2802_v25  ;;  %v2084_v54 = vrot.slane %v2077_v49, %v2802_v25  ;;  %v2092_v56 = vrot.slane %v2295_v50, %v2802_v25 }
 0x4e4   :  { %v2094_v58 = vcombine.high %v2068_v51, %v2076_v53  ;;  %v2110_v59 = vcombine.high %v2084_v54, %v2092_v56  ;;  %v2093_v62 = vcombine.low %v2068_v51, %v2076_v53  ;;  %v2109_v63 = vcombine.low %v2084_v54, %v2092_v56 }
 0x4e6   :  { %v2108_v2 = vrot.slane %v2094_v58, %v2824_v47  ;;  %v2124_v3 = vrot.slane %v2110_v59, %v2824_v47  ;;  %v2101_v0 = vrot.slane %v2093_v62, %v2824_v47  ;;  %v2117_v4 = vrot.slane %v2109_v63, %v2824_v47 }
 0x4e8   :  { %v2127_v5 = vcombine.low %v2108_v2, %v2124_v3  ;;  %v2126_v14 = vcombine.high %v2101_v0, %v2117_v4  ;;  %v2128_v6 = vcombine.high %v2108_v2, %v2124_v3  ;;  %v2125_v7 = vcombine.low %v2101_v0, %v2117_v4 }
 0x4ea   :  { %2141 = vrot.lane.b32.xlu0 %v2127_v5, %s2663_s8  ;;  %2133 = vrot.lane.b32.xlu1 %v2126_v14, %s2664_s9 }
 0x4ee   :  { %2149 = vrot.lane.b32.xlu0 %v2128_v6, %s2665_s10  ;;  %2147 = vrot.lane.b32.xlu1 %v2060_v60, %s2665_s10 }
 0x54d   :  { %v2140_v25 = vpop.permute.xlu1 %2139  ;;  %v2132_v13 = vpop.permute.xlu0 %2131 }
 0x54e   :  { %v2153_v11 = vsel %vm1007_vm2, %v2057_v33, %v2132_v13 }
 0x54f   :  { %v2156_v15 = vsel %vm2155_vm4, %v2153_v11, %v2140_v25 }
 0x55c   :  { %v2142_v10 = vpop.permute.xlu0 %2141  ;;  %v2134_v45 = vpop.permute.xlu1 %2133 }
 0x55d   :  { %v2154_v12 = vsel %vm1007_vm2, %v2125_v7, %v2134_v45 }
 0x55e   :  { %v2157_v61 = vsel %vm2155_vm4, %v2154_v12, %v2142_v10 }
 0x560   :  { %v2150_v47 = vpop.permute.xlu0 %2149  ;;  %v2148_v29 = vpop.permute.xlu1 %2147 }
 0x561   :  { %v2160_v16 = vsel %vm2158_vm5, %v2157_v61, %v2150_v47  ;;  %v2159_v17 = vsel %vm2158_vm5, %v2156_v15, %v2148_v29 }
 0x562   :  { %v2162_v55 = vadd.f32 %v2160_v16, %v2786_v9  ;;  %v2161_v18 = vadd.f32 %v2159_v17, %v2784_v8 }
 0x564   :  { %v2163_v19 = vpack.c.bf16 %v2162_v55, %v2161_v18 }
 0x566   :  { %2447 = vmatmul.mubr.msk.bf16.vlgmr.msra.gmra.mrb[32].mxu1 %vm116_vm1, %v2163_v19 }
 0x639   :  { %v2224_v21 = vpop.f32.mrb[32].mxu1 }
 0x63a   :  { %v2225_v52 = vadd.f32 %v2296_v20, %v2224_v21  ;;  %v2448_v22 = vpop.f32.mrb[33].mxu1 }
 0x63b   :  { %v2227_v24 = vpop.f32.mrb[34].mxu1 }
 0x63c   :  { %v2231_v27 = vmax.f32 %v2225_v52, 0.0  ;;  %v2228_v28 = vadd.f32 %v2296_v20, %v2227_v24  ;;  %v2449_v1 = vpop.f32.mrb[35].mxu1 }
 0x63e   :  { %v2233_v30 = vadd.f32 %v2231_v27, %v2161_v18  ;;  %v2232_v31 = vmax.f32 %v2228_v28, 0.0 }
 0x640   :  { %v2235_v34 = vpack.c.bf16 %v2233_v30, %v2233_v30  ;;  %v2234_v9 = vadd.f32 %v2232_v31, %v2162_v55 }
 0x642   :  { %v2236_v60 = vpack.c.bf16 %v2234_v9, %v2234_v9  ;;  %2238 = vst.msk [vmem:[#allocation11] sm:$0xf] %vm2237_vm6, %v2235_v34 }
 0x644   :  { %2239 = vst.msk [vmem:[#allocation11 + $0x4] sm:$0xf] %vm2237_vm6, %v2236_v60 }
 0x645   :  { %2628 = shalt.err (!%p2625_p2)
}
 0x646   :  { %s2629_s16 = scalar_lea.hbm %s3133_s5, 128 }
 0x647   :  { %p2630_p3 = scmp.ne.s32.totalorder %s3133_s5, %s2629_s16  ;;  %p2633_p4 = scmp.lt.u32.totalorder %s2629_s16, %s3133_s5 }
 0x649   :  { %p2635_p5 = pnand %p2633_p4, %p2630_p3 }
 0x64b   :  { %2638 = shalt.err (!%p2635_p5)
}
 0x64c   :  { %2251 = dma.vmem_to_hbm [thread:$0]  %s2246_s12, 128, %s3133_s5, [#allocation4], %s2649_s30, %s2649_s30, %s2650_s6  }
 0x64d   :  { %2645 = dma.done.wait [#allocation4], 128  }
 0x64e   :  { %2646 = vsyncadd [#allocation4], 4294967168 }
 0x64f   :  { %2255 = vsyncpa [#allocation3], 1 }
 0x650   :  { %2256 = vsyncpa [#allocation6], 1 }
 0x651   :  { %2257 = vsyncpa [#allocation9], 1 }
 0x652   :  { %2258 = vsyncpa [#allocation4], 1 }

</bundles_post_ra>
